<compile_context>
chip_gen: v6e
topology: v6e:2x2x1
jax: 0.10.0
libtpu: 0.0.40
codegen_flags: <defaults>
</compile_context>

<pallas_src>
import math

import jax
import jax.numpy as jnp
from jax.experimental import pallas as pl
from jax.experimental.pallas import tpu as pltpu


def nalu_kernel(x_ref, wag_ref, wmul_ref, o_ref):
    """One packed row-tile of the NALU forward.

    x_ref    : (tile, P*In)     packed input rows (P original rows per row)
    wag_ref  : (P*In, 2*P*Out)  block-diagonal [add-cell | gate] weights
    wmul_ref : (P*In, P*Out)    block-diagonal multiplication-cell weights
    o_ref    : (tile, P*Out)    packed output rows (lane-dense: P*Out == 128)
    """
    x = x_ref[...].astype(jnp.float32)
    w_ag = wag_ref[...]
    w_mul = wmul_ref[...]
    pout = w_mul.shape[1]

    # Fused add-cell + gate matmul: one MXU push; the split at `pout` is a
    # static 128-lane-aligned slice in the packed formulation.
    ag = jnp.dot(x, w_ag, preferred_element_type=jnp.float32)
    a = ag[:, :pout]                          # addition cell
    g = jax.nn.sigmoid(ag[:, pout:])          # gate (EUP)

    # Multiplication cell in log space: exp(log(|x| + 1e-3) @ W_mul).
    # Elementwise ops are layout-agnostic, so they run lane-dense on the
    # packed tile.
    log_x = jnp.log(jnp.abs(x) + 0.001)
    m = jnp.exp(jnp.dot(log_x, w_mul, preferred_element_type=jnp.float32))

    o_ref[...] = (g * a + (1.0 - g) * m).astype(o_ref.dtype)


def _block_diag(w, p):
    """(In, Out) -> (p*In, p*Out) block-diagonal replication of w."""
    if p == 1:
        return w
    return jnp.kron(jnp.eye(p, dtype=w.dtype), w)


def _choose_tile(n_rows, row_bytes_in):
    """Pick a packed-row tile size.

    Per-grid-step overhead (~0.35 us) dominates when total traffic is small,
    so use a single step there.  For large inputs, use ~1-2 MiB tiles but at
    least 6 steps so each v7x TensorCore gets >= 3 pipelined steps (DMA/compute
    overlap per core).  VMEM is never the constraint at these shapes.
    """
    total = n_rows * row_bytes_in
    if total <= (4 << 20):
        return n_rows
    tile = min(2048, n_rows // 6)
    tile = max(64, (tile // 8) * 8)   # keep sublane dim a multiple of 8
    if tile >= n_rows:
        return n_rows
    return tile


def nalu_forward(x, wt_add, ws_add, wt_mul, ws_mul, gate_w):
    """NALU forward.

    x: (..., In); weights: (Out, In) in PyTorch layout. Returns (..., Out):
        y = g * (x @ W_add.T) + (1 - g) * exp(log(|x| + 1e-3) @ W_mul.T)
        with g = sigmoid(x @ G.T),  W_* = tanh(What) * sigmoid(Mhat).
    """
    orig_shape = x.shape
    In = orig_shape[-1]
    Out = wt_add.shape[0]
    x2 = x.reshape(-1, In)
    N = x2.shape[0]

    # Hoisted NAC weight transform (tiny (Out, In) arrays; once per call).
    w_add = (jnp.tanh(wt_add) * jax.nn.sigmoid(ws_add)).T.astype(jnp.float32)  # (In, Out)
    w_mul = (jnp.tanh(wt_mul) * jax.nn.sigmoid(ws_mul)).T.astype(jnp.float32)  # (In, Out)
    w_gate = gate_w.T.astype(jnp.float32)                                      # (In, Out)

    # Row packing factor: pack P rows per packed row so the output lane width
    # is P*Out == 128 (lane-dense stores) and the input lane width P*In is a
    # multiple of 128 (lane-dense loads / elementwise / MXU K dim).
    if 0 < Out <= 128 and 128 % Out == 0:
        P = 128 // Out
    else:
        P = 1  # TODO(synk): no lane-packing when out_features does not divide 128

    N_pad = ((N + P - 1) // P) * P
    if N_pad != N:
        x2 = jnp.pad(x2, ((0, N_pad - N), (0, 0)))
    Np = N_pad // P

    # Block-diagonal replicated weights; add-cell and gate fused along lanes.
    w_add_b = _block_diag(w_add, P)                          # (P*In, P*Out)
    w_gate_b = _block_diag(w_gate, P)                        # (P*In, P*Out)
    w_mul_b = _block_diag(w_mul, P)                          # (P*In, P*Out)
    w_ag = jnp.concatenate([w_add_b, w_gate_b], axis=1)      # (P*In, 2*P*Out)

    x_p = x2.reshape(Np, P * In)                             # free contiguous reshape

    tile = _choose_tile(Np, P * In * x_p.dtype.itemsize)
    grid = (pl.cdiv(Np, tile),)

    out_p = pl.pallas_call(
        nalu_kernel,
        out_shape=jax.ShapeDtypeStruct((Np, P * Out), x.dtype),
        grid_spec=pltpu.PrefetchScalarGridSpec(
            num_scalar_prefetch=0,
            grid=grid,
            in_specs=[
                pl.BlockSpec((tile, P * In), lambda i: (i, 0)),
                pl.BlockSpec((P * In, 2 * P * Out), lambda i: (0, 0)),  # VMEM-resident
                pl.BlockSpec((P * In, P * Out), lambda i: (0, 0)),      # VMEM-resident
            ],
            out_specs=pl.BlockSpec((tile, P * Out), lambda i: (i, 0)),
        ),
        compiler_params=pltpu.CompilerParams(
            # Row-wise independent work: shards across both TCs on v7x,
            # neutral on v5e/v6e.
            dimension_semantics=("parallel",),
        ),
    )(x_p, w_ag, w_mul_b)

    out = out_p.reshape(N_pad, Out)[:N]                      # free reshape + slice
    return out.reshape(orig_shape[:-1] + (Out,))


def nalu_reference(x, wt_add, ws_add, wt_mul, ws_mul, gate_w):
    w_add = jnp.tanh(wt_add) * jax.nn.sigmoid(ws_add)
    w_mul = jnp.tanh(wt_mul) * jax.nn.sigmoid(ws_mul)
    a = x @ w_add.T
    m = jnp.exp(jnp.log(jnp.abs(x) + 0.001) @ w_mul.T)
    g = jax.nn.sigmoid(x @ gate_w.T)
    return g * a + (1.0 - g) * m


if __name__ == "__main__":
    in_features = 32
    out_features = 16
    batch = 1024

    key = jax.random.PRNGKey(0)
    k_x, k1, k2, k3, k4, k5 = jax.random.split(key, 6)

    # Deterministic init mirroring NAC/NALU reset_parameters: U(-stdv, stdv),
    # stdv = 1/sqrt(out_features).
    stdv = 1.0 / math.sqrt(out_features)
    wshape = (out_features, in_features)
    wt_add = jax.random.uniform(k1, wshape, jnp.float32, -stdv, stdv)
    ws_add = jax.random.uniform(k2, wshape, jnp.float32, -stdv, stdv)
    wt_mul = jax.random.uniform(k3, wshape, jnp.float32, -stdv, stdv)
    ws_mul = jax.random.uniform(k4, wshape, jnp.float32, -stdv, stdv)
    gate_w = jax.random.uniform(k5, wshape, jnp.float32, -stdv, stdv)

    x = jax.random.normal(k_x, (batch, in_features), jnp.float32)

    out = nalu_forward(x, wt_add, ws_add, wt_mul, ws_mul, gate_w)
    out = jax.block_until_ready(out)

    ref = nalu_reference(x, wt_add, ws_add, wt_mul, ws_mul, gate_w)
    assert out.shape == (batch, out_features)
    assert jnp.allclose(out, ref, atol=1e-5, rtol=1e-5), "mismatch vs reference"

    print("KERNEL_OK")
</pallas_src>

<mosaic_0001>
module attributes {stable_mosaic.version = 11 : i64} {
  func.func @nalu_kernel(%arg0: i32, %arg1: memref<128x256xf32, #tpu.memory_space<vmem>>, %arg2: memref<256x256xf32, #tpu.memory_space<vmem>>, %arg3: memref<256x128xf32, #tpu.memory_space<vmem>>, %arg4: memref<128x128xf32, #tpu.memory_space<vmem>>) attributes {dimension_semantics = [#tpu.dimension_semantics<parallel>], iteration_bounds = array<i64: 1>, scalar_prefetch = 0 : i64, scratch_operands = 0 : i64, tpu.core_type = #tpu.core_type<tc>, window_params = [{transform_indices = @transform_0, window_bounds = array<i64: 128, 256>}, {pipeline_mode = #tpu.pipeline_mode<synchronous>, transform_indices = @transform_1, window_bounds = array<i64: 256, 256>}, {pipeline_mode = #tpu.pipeline_mode<synchronous>, transform_indices = @transform_2, window_bounds = array<i64: 256, 128>}, {transform_indices = @transform_3, window_bounds = array<i64: 128, 128>}]} {
    %c0 = arith.constant 0 : index
    %c0_0 = arith.constant 0 : index
    %0 = vector.load %arg1[%c0, %c0_0] : memref<128x256xf32, #tpu.memory_space<vmem>>, vector<128x256xf32>
    %c0_1 = arith.constant 0 : index
    %c0_2 = arith.constant 0 : index
    %1 = vector.load %arg2[%c0_1, %c0_2] : memref<256x256xf32, #tpu.memory_space<vmem>>, vector<256x256xf32>
    %c0_3 = arith.constant 0 : index
    %c0_4 = arith.constant 0 : index
    %2 = vector.load %arg3[%c0_3, %c0_4] : memref<256x128xf32, #tpu.memory_space<vmem>>, vector<256x128xf32>
    %cst = arith.constant dense<0.000000e+00> : vector<128x256xf32>
    %3 = tpu.matmul %0, %1, %cst {dimension_numbers = #tpu.dot_dimension_numbers<[1], [0], [0], [1], [0, 0, 1, 1], [], []>} : vector<128x256xf32>, vector<256x256xf32>, vector<128x256xf32> -> vector<128x256xf32>
    %4 = vector.extract_strided_slice %3 {offsets = [0, 0], sizes = [128, 128], strides = [1, 1]} : vector<128x256xf32> to vector<128x128xf32>
    %5 = vector.extract_strided_slice %3 {offsets = [0, 128], sizes = [128, 128], strides = [1, 1]} : vector<128x256xf32> to vector<128x128xf32>
    %6 = arith.negf %5 : vector<128x128xf32>
    %7 = math.exp %6 : vector<128x128xf32>
    %cst_5 = arith.constant 1.000000e+00 : f32
    %8 = vector.broadcast %cst_5 : f32 to vector<128x128xf32>
    %9 = arith.addf %8, %7 : vector<128x128xf32>
    %10 = arith.divf %8, %9 : vector<128x128xf32>
    %11 = math.absf %0 : vector<128x256xf32>
    %cst_6 = arith.constant 1.000000e-03 : f32
    %12 = vector.broadcast %cst_6 : f32 to vector<128x256xf32>
    %13 = arith.addf %11, %12 : vector<128x256xf32>
    %14 = math.log %13 : vector<128x256xf32>
    %cst_7 = arith.constant dense<0.000000e+00> : vector<128x128xf32>
    %15 = tpu.matmul %14, %2, %cst_7 {dimension_numbers = #tpu.dot_dimension_numbers<[1], [0], [0], [1], [0, 0, 1, 1], [], []>} : vector<128x256xf32>, vector<256x128xf32>, vector<128x128xf32> -> vector<128x128xf32>
    %16 = math.exp %15 : vector<128x128xf32>
    %17 = arith.mulf %10, %4 : vector<128x128xf32>
    %cst_8 = arith.constant 1.000000e+00 : f32
    %18 = vector.broadcast %cst_8 : f32 to vector<128x128xf32>
    %19 = arith.subf %18, %10 : vector<128x128xf32>
    %20 = arith.mulf %19, %16 : vector<128x128xf32>
    %21 = arith.addf %17, %20 : vector<128x128xf32>
    %c0_9 = arith.constant 0 : index
    %c0_10 = arith.constant 0 : index
    %22 = vector.load %arg4[%c0_9, %c0_10] : memref<128x128xf32, #tpu.memory_space<vmem>>, vector<128x128xf32>
    tpu.vector_store %arg4[%c0_9, %c0_10], %21 {strides = array<i32>} : memref<128x128xf32, #tpu.memory_space<vmem>>, vector<128x128xf32>,
    return
  }
  func.func @transform_0(%arg0: i32) -> (i32, i32) {
    %c0_i32 = arith.constant 0 : i32
    %c0_i32_0 = arith.constant 0 : i32
    return %arg0, %c0_i32 : i32, i32
  }
  func.func @transform_1(%arg0: i32) -> (i32, i32) {
    %c0_i32 = arith.constant 0 : i32
    %c0_i32_0 = arith.constant 0 : i32
    %c0_i32_1 = arith.constant 0 : i32
    return %c0_i32, %c0_i32_0 : i32, i32
  }
  func.func @transform_2(%arg0: i32) -> (i32, i32) {
    %c0_i32 = arith.constant 0 : i32
    %c0_i32_0 = arith.constant 0 : i32
    %c0_i32_1 = arith.constant 0 : i32
    return %c0_i32, %c0_i32_0 : i32, i32
  }
  func.func @transform_3(%arg0: i32) -> (i32, i32) {
    %c0_i32 = arith.constant 0 : i32
    %c0_i32_0 = arith.constant 0 : i32
    return %arg0, %c0_i32 : i32, i32
  }
}

</mosaic_0001>

<bundles_post_ra>
// kernel: tpu_custom_call.1
= control target key start
LH: loop header
LB: loop body
LE: loop exit
PB: predicated region body
PF: predicated region fallthrough
CT: control target
= control target key end

     0   :  { %8 = vsyncpa [#allocation3], 0  ;;  %s1469_s0 = inlined_call_operand.hbm [shape: f32[128,256], index: 0, kind: input, shape index: {}]   ;;  %s1470_s1 = inlined_call_operand.hbm [shape: f32[256,256], index: 1, kind: input, shape index: {}]   ;;  %s1471_s2 = inlined_call_operand.hbm [shape: f32[256,128], index: 2, kind: input, shape index: {}]   ;;  %s1472_s3 = inlined_call_operand.hbm [shape: f32[128,128], index: 3, kind: output, shape index: {}]  }
   0x1   :  { %9 = vsyncpa [#allocation6], 0 }
   0x2   :  { %10 = vsyncpa [#allocation4], 0  ;;  %s1194_s12 = smov [#allocation5]   ;;  %s1195_s14 = smov [#allocation2]  }
   0x3   :  { %s28_s13 = sshll.u32 %s1194_s12, 4  ;;  %s16_s15 = sshll.u32 %s1195_s14, 4  ;;  %s29_s13 = int_to_ptr.vmem [resolvable:$true] %s28_s13  ;;  %s17_s15 = int_to_ptr.vmem [resolvable:$true] %s16_s15 }
   0x4   :  { %s1116_s16 = scalar_lea.vmem %s29_s13, 8192  ;;  %p1121_p1 = scmp.lt.s32.totalorder %s29_s13, %s29_s13 }
   0x5   :  { %p1117_p0 = scmp.ne.s32.totalorder %s29_s13, %s1116_s16  ;;  %p1122_p2 = scmp.lt.s32.totalorder %s1116_s16, %s1116_s16 }
   0x7   :  { %p1123_p3 = por %p1122_p2, %p1121_p1 }
   0x9   :  { %p1124_p4 = pnand %p1123_p3, %p1117_p0 }
   0xb   :  { %1127 = shalt.err (!%p1124_p4)
}
   0xc   :  { %s1196_s17 = smov 256   ;;  %s1197_s18 = smov 16  }
   0xd   :  { %34 = dma.hbm_to_vmem [thread:$0]  %s1470_s1, 8192, %s29_s13, [#allocation6], %s1196_s17, %s1196_s17, %s1197_s18  }
   0xe   :  { %s1136_s21 = scalar_lea.vmem %s17_s15, 4096  ;;  %p1141_p6 = scmp.lt.s32.totalorder %s17_s15, %s17_s15 }
   0xf   :  { %p1137_p5 = scmp.ne.s32.totalorder %s17_s15, %s1136_s21  ;;  %p1142_p7 = scmp.lt.s32.totalorder %s1136_s21, %s1136_s21 }
  0x11   :  { %p1143_p8 = por %p1142_p7, %p1141_p6 }
  0x13   :  { %p1144_p9 = pnand %p1143_p8, %p1137_p5 }
  0x15   :  { %1147 = shalt.err (!%p1144_p9)
}
  0x16   :  { %22 = dma.hbm_to_vmem [thread:$0]  %s1469_s0, 4096, %s17_s15, [#allocation3], %s1196_s17, %s1196_s17, %s1197_s18  }
  0x17   :  { %s1198_s24 = smov [#allocation7]  }
  0x18   :  { %s40_s25 = sshll.u32 %s1198_s24, 4  ;;  %s41_s25 = int_to_ptr.vmem [resolvable:$true] %s40_s25 }
  0x19   :  { %s1156_s26 = scalar_lea.vmem %s41_s25, 4096  ;;  %p1161_p11 = scmp.lt.s32.totalorder %s41_s25, %s41_s25 }
  0x1a   :  { %p1157_p10 = scmp.ne.s32.totalorder %s41_s25, %s1156_s26  ;;  %p1162_p12 = scmp.lt.s32.totalorder %s1156_s26, %s1156_s26 }
  0x1c   :  { %p1163_p13 = por %p1162_p12, %p1161_p11 }
  0x1e   :  { %p1164_p0 = pnand %p1163_p13, %p1157_p10 }
  0x20   :  { %1167 = shalt.err (!%p1164_p0)
}
  0x21   :  { %s1199_s1 = smov 128   ;;  %s1200_s27 = smov 8  }
  0x22   :  { %46 = dma.hbm_to_vmem [thread:$0]  %s1471_s2, 4096, %s41_s25, [#allocation6], %s1199_s1, %s1199_s1, %s1200_s27  }
  0x23   :  { %1188 = dma.done.wait [#allocation3], 4096  }
  0x24   :  { %1189 = vsyncadd [#allocation3], 4294963200 }
  0x25   :  { %1190 = dma.done.wait [#allocation6], 12288  }
  0x26   :  { %1191 = vsyncadd [#allocation6], 4294955008  ;;  %v119_v0 = vld [vmem:[#allocation5 + $0xf8] sm:$0xff]  ;;  %v118_v1 = vld [vmem:[#allocation5 + $0xf0] sm:$0xff]  ;;  %s1201_s0 = smov [#allocation8]  }
  0x27   :  { %v117_v2 = vld [vmem:[#allocation5 + $0xe8] sm:$0xff]  ;;  %184 = vmatprep.subr.mxu0 %v119_v0  ;;  %v116_v3 = vld [vmem:[#allocation5 + $0xe0] sm:$0xff]  ;;  %v115_v4 = vld [vmem:[#allocation5 + $0xd8] sm:$0xff]  ;;  %s831_s2 = sshll.u32 %s1201_s0, 4  ;;  %s832_s2 = int_to_ptr.vmem [resolvable:$true] %s831_s2 }
  0x28   :  { %185 = vmatpush1.msra.mxu0 %v118_v1  ;;  %v114_v5 = vld [vmem:[#allocation5 + $0xd0] sm:$0xff]  ;;  %v113_v6 = vld [vmem:[#allocation5 + $0xc8] sm:$0xff]  ;;  %v112_v7 = vld [vmem:[#allocation5 + $0xc0] sm:$0xff]  ;;  %s1168_s30 = scalar_lea.vmem %s832_s2, 2048  ;;  %p1173_p2 = scmp.lt.s32.totalorder %s832_s2, %s832_s2 }
  0x29   :  { %186 = vmatprep.subr.mxu0 %v117_v2  ;;  %v111_v8 = vld [vmem:[#allocation5 + $0xb8] sm:$0xff]  ;;  %v110_v9 = vld [vmem:[#allocation5 + $0xb0] sm:$0xff]  ;;  %v109_v10 = vld [vmem:[#allocation5 + $0xa8] sm:$0xff]  ;;  %p1169_p1 = scmp.ne.s32.totalorder %s832_s2, %s1168_s30  ;;  %p1174_p3 = scmp.lt.s32.totalorder %s1168_s30, %s1168_s30 }
  0x2a   :  { %187 = vmatpush1.msra.mxu0 %v116_v3  ;;  %v108_v11 = vld [vmem:[#allocation5 + $0xa0] sm:$0xff]  ;;  %v107_v12 = vld [vmem:[#allocation5 + $0x98] sm:$0xff]  ;;  %v106_v13 = vld [vmem:[#allocation5 + $0x90] sm:$0xff] }
  0x2b   :  { %188 = vmatprep.subr.mxu0 %v115_v4  ;;  %v105_v14 = vld [vmem:[#allocation5 + $0x88] sm:$0xff]  ;;  %v104_v15 = vld [vmem:[#allocation5 + $0x80] sm:$0xff]  ;;  %v103_v16 = vld [vmem:[#allocation5 + $0x78] sm:$0xff]  ;;  %p1175_p4 = por %p1174_p3, %p1173_p2 }
  0x2c   :  { %189 = vmatpush1.msra.mxu0 %v114_v5  ;;  %v102_v17 = vld [vmem:[#allocation5 + $0x70] sm:$0xff]  ;;  %v183_v18 = vld [vmem:[#allocation7 + $0xf8] sm:$0xff]  ;;  %v101_v19 = vld [vmem:[#allocation5 + $0x68] sm:$0xff] }
  0x2d   :  { %190 = vmatprep.subr.mxu0 %v113_v6  ;;  %860 = vmatprep.subr.mxu1 %v183_v18  ;;  %v167_v20 = vld [vmem:[#allocation7 + $0x78] sm:$0xff]  ;;  %v100_v21 = vld [vmem:[#allocation5 + $0x60] sm:$0xff]  ;;  %v182_v22 = vld [vmem:[#allocation7 + $0xf0] sm:$0xff]  ;;  %p1176_p5 = pnand %p1175_p4, %p1169_p1 }
  0x2e   :  { %191 = vmatpush1.msra.mxu0 %v112_v7  ;;  %861 = vmatpush3.msra.mxu1 %v167_v20  ;;  %v166_v23 = vld [vmem:[#allocation7 + $0x70] sm:$0xff]  ;;  %v99_v24 = vld [vmem:[#allocation5 + $0x58] sm:$0xff]  ;;  %v181_v25 = vld [vmem:[#allocation7 + $0xe8] sm:$0xff] }
  0x2f   :  { %192 = vmatprep.subr.mxu0 %v111_v8  ;;  %862 = vmatprep.subr.mxu1 %v182_v22  ;;  %v98_v26 = vld [vmem:[#allocation5 + $0x50] sm:$0xff]  ;;  %v165_v27 = vld [vmem:[#allocation7 + $0x68] sm:$0xff]  ;;  %v180_v28 = vld [vmem:[#allocation7 + $0xe0] sm:$0xff] }
  0x30   :  { %193 = vmatpush1.msra.mxu0 %v110_v9  ;;  %863 = vmatpush3.msra.mxu1 %v166_v23  ;;  %v97_v29 = vld [vmem:[#allocation5 + $0x48] sm:$0xff]  ;;  %v164_v30 = vld [vmem:[#allocation7 + $0x60] sm:$0xff]  ;;  %v179_v32 = vld [vmem:[#allocation7 + $0xd8] sm:$0xff] }
  0x31   :  { %194 = vmatprep.subr.mxu0 %v109_v10  ;;  %864 = vmatprep.subr.mxu1 %v181_v25  ;;  %v96_v31 = vld [vmem:[#allocation5 + $0x40] sm:$0xff]  ;;  %v95_v33 = vld [vmem:[#allocation5 + $0x38] sm:$0xff]  ;;  %v94_v35 = vld [vmem:[#allocation5 + $0x30] sm:$0xff] }
  0x32   :  { %195 = vmatpush1.msra.mxu0 %v108_v11  ;;  %865 = vmatpush3.msra.mxu1 %v165_v27  ;;  %v163_v34 = vld [vmem:[#allocation7 + $0x58] sm:$0xff]  ;;  %v178_v36 = vld [vmem:[#allocation7 + $0xd0] sm:$0xff]  ;;  %v93_v37 = vld [vmem:[#allocation5 + $0x28] sm:$0xff] }
  0x33   :  { %196 = vmatprep.subr.mxu0 %v107_v12  ;;  %866 = vmatprep.subr.mxu1 %v180_v28  ;;  %v162_v38 = vld [vmem:[#allocation7 + $0x50] sm:$0xff]  ;;  %v92_v39 = vld [vmem:[#allocation5 + $0x20] sm:$0xff]  ;;  %v91_v40 = vld [vmem:[#allocation5 + $0x18] sm:$0xff] }
  0x34   :  { %197 = vmatpush1.msra.mxu0 %v106_v13  ;;  %867 = vmatpush3.msra.mxu1 %v164_v30  ;;  %v177_v41 = vld [vmem:[#allocation7 + $0xc8] sm:$0xff]  ;;  %v90_v42 = vld [vmem:[#allocation5 + $0x10] sm:$0xff]  ;;  %v88_v45 = vld [vmem:[#allocation5] sm:$0xff] }
  0x35   :  { %198 = vmatprep.subr.mxu0 %v105_v14  ;;  %868 = vmatprep.subr.mxu1 %v179_v32  ;;  %v89_v43 = vld [vmem:[#allocation5 + $0x8] sm:$0xff]  ;;  %v176_v46 = vld [vmem:[#allocation7 + $0xc0] sm:$0xff]  ;;  %v151_v49 = vld [vmem:[#allocation5 + $0x1f8] sm:$0xff] }
  0x36   :  { %199 = vmatpush1.msra.mxu0 %v104_v15  ;;  %869 = vmatpush3.msra.mxu1 %v163_v34  ;;  %v161_v44 = vld [vmem:[#allocation7 + $0x48] sm:$0xff]  ;;  %v1234_v48 = vld [vmem:[#allocation2] sm:$0xff]  ;;  %v150_v53 = vld [vmem:[#allocation5 + $0x1f0] sm:$0xff] }
  0x37   :  { %200 = vmatprep.subr.mxu0 %v103_v16  ;;  %870 = vmatprep.subr.mxu1 %v178_v36  ;;  %v57_v47 = vld [vmem:[#allocation2 + $0x8] sm:$0xff]  ;;  %v160_v50 = vld [vmem:[#allocation7 + $0x40] sm:$0xff]  ;;  %v441_v52 = vand.u32 2147483647, %v1234_v48  ;;  %v175_v54 = vld [vmem:[#allocation7 + $0xb8] sm:$0xff] }
  0x38   :  { %201 = vmatpush1.msra.mxu0 %v102_v17  ;;  %871 = vmatpush3.msra.mxu1 %v162_v38  ;;  %v442_v51 = vand.u32 2147483647, %v57_v47  ;;  %v1237_v55 = vld [vmem:[#allocation2 + $0x18] sm:$0xff]  ;;  %v149_v56 = vld [vmem:[#allocation5 + $0x1e8] sm:$0xff]  ;;  %v148_v60 = vld [vmem:[#allocation5 + $0x1e0] sm:$0xff] }
  0x39   :  { %202 = vmatprep.subr.mxu0 %v101_v19  ;;  %872 = vmatprep.subr.mxu1 %v177_v41  ;;  %v473_v58 = vadd.f32 0.001, %v441_v52  ;;  %v444_v59 = vand.u32 2147483647, %v1237_v55  ;;  %v159_v61 = vld [vmem:[#allocation7 + $0x38] sm:$0xff]  ;;  %v1240_v62 = vld [vmem:[#allocation2 + $0x10] sm:$0xff] }
  0x3a   :  { %203 = vmatpush1.msra.mxu0 %v100_v21  ;;  %873 = vmatpush3.msra.mxu1 %v161_v44  ;;  %v474_v57 = vadd.f32 0.001, %v442_v51  ;;  %v147_v63 = vld [vmem:[#allocation5 + $0x1d8] sm:$0xff]  ;;  %v174_v0 = vld [vmem:[#allocation7 + $0xb0] sm:$0xff]  ;;  %v443_v2 = vand.u32 2147483647, %v1240_v62 }
  0x3b   :  { %204 = vmatprep.subr.mxu0 %v99_v24  ;;  %874 = vmatprep.subr.mxu1 %v176_v46  ;;  %v476_v1 = vadd.f32 0.001, %v444_v59  ;;  %v1243_v3 = vld [vmem:[#allocation2 + $0x28] sm:$0xff]  ;;  %v146_v4 = vld [vmem:[#allocation5 + $0x1d0] sm:$0xff]  ;;  %v1246_v8 = vld [vmem:[#allocation2 + $0x20] sm:$0xff] }
  0x3c   :  { %205 = vmatpush1.msra.mxu0 %v98_v26  ;;  %875 = vmatpush3.msra.mxu1 %v160_v50  ;;  %948 = vlog2.f32 %v474_v57  ;;  %v158_v5 = vld [vmem:[#allocation7 + $0x30] sm:$0xff]  ;;  %v173_v6 = vld [vmem:[#allocation7 + $0xa8] sm:$0xff]  ;;  %v446_v7 = vand.u32 2147483647, %v1243_v3  ;;  %v475_v11 = vadd.f32 0.001, %v443_v2 }
  0x3d   :  { %206 = vmatprep.subr.mxu0 %v97_v29  ;;  %876 = vmatprep.subr.mxu1 %v175_v54  ;;  %950 = vlog2.f32 %v473_v58  ;;  %v145_v9 = vld [vmem:[#allocation5 + $0x1c8] sm:$0xff]  ;;  %v172_v12 = vld [vmem:[#allocation7 + $0xa0] sm:$0xff]  ;;  %v445_v13 = vand.u32 2147483647, %v1246_v8  ;;  %v1249_v17 = vld [vmem:[#allocation2 + $0x38] sm:$0xff] }
  0x3e   :  { %207 = vmatpush1.msra.mxu0 %v96_v31  ;;  %248 = vmatprep.mubr.f32.mxu0 %v57_v47  ;;  %952 = vlog2.f32 %v476_v1  ;;  %v157_v10 = vld [vmem:[#allocation7 + $0x28] sm:$0xff]  ;;  %v144_v14 = vld [vmem:[#allocation5 + $0x1c0] sm:$0xff]  ;;  %v478_v16 = vadd.f32 0.001, %v446_v7  ;;  %v1251_v18 = vld [vmem:[#allocation2 + $0x30] sm:$0xff] }
  0x3f   :  { %208 = vmatprep.subr.mxu0 %v95_v33  ;;  %877 = vmatpush3.msra.mxu1 %v159_v61  ;;  %v156_v15 = vld [vmem:[#allocation7 + $0x20] sm:$0xff]  ;;  %v143_v19 = vld [vmem:[#allocation5 + $0x1b8] sm:$0xff]  ;;  %954 = vlog2.f32 %v475_v11  ;;  %v477_v20 = vadd.f32 0.001, %v445_v13  ;;  %v448_v21 = vand.u32 2147483647, %v1249_v17 }
  0x40   :  { %209 = vmatpush1.msra.mxu0 %v94_v35  ;;  %878 = vmatprep.subr.mxu1 %v174_v0  ;;  %v447_v22 = vand.u32 2147483647, %v1251_v18  ;;  %v142_v23 = vld [vmem:[#allocation5 + $0x1b0] sm:$0xff]  ;;  %v171_v24 = vld [vmem:[#allocation7 + $0x98] sm:$0xff]  ;;  %956 = vlog2.f32 %v478_v16  ;;  %v1255_v26 = vld [vmem:[#allocation2 + $0x48] sm:$0xff] }
  0x41   :  { %210 = vmatprep.subr.mxu0 %v93_v37  ;;  %879 = vmatpush3.msra.mxu1 %v158_v5  ;;  %v155_v25 = vld [vmem:[#allocation7 + $0x18] sm:$0xff]  ;;  %v141_v27 = vld [vmem:[#allocation5 + $0x1a8] sm:$0xff]  ;;  %958 = vlog2.f32 %v477_v20  ;;  %v170_v28 = vld [vmem:[#allocation7 + $0x90] sm:$0xff]  ;;  %v480_v29 = vadd.f32 0.001, %v448_v21 }
  0x42   :  { %211 = vmatpush1.msra.mxu0 %v92_v39  ;;  %880 = vmatprep.subr.mxu1 %v173_v6  ;;  %v479_v30 = vadd.f32 0.001, %v447_v22  ;;  %v450_v31 = vand.u32 2147483647, %v1255_v26  ;;  %v140_v32 = vld [vmem:[#allocation5 + $0x1a0] sm:$0xff]  ;;  %v1260_v34 = vld [vmem:[#allocation2 + $0x58] sm:$0xff] }
  0x43   :  { %212 = vmatprep.subr.mxu0 %v91_v40  ;;  %881 = vmatpush3.msra.mxu1 %v157_v10  ;;  %v1258_v33 = vld [vmem:[#allocation2 + $0x40] sm:$0xff]  ;;  %v1262_v35 = vld [vmem:[#allocation2 + $0x50] sm:$0xff]  ;;  %960 = vlog2.f32 %v480_v29  ;;  %v452_v38 = vand.u32 2147483647, %v1260_v34  ;;  %v139_v39 = vld [vmem:[#allocation5 + $0x198] sm:$0xff] }
  0x44   :  { %213 = vmatpush1.msra.mxu0 %v90_v42  ;;  %882 = vmatprep.subr.mxu1 %v172_v12  ;;  %v482_v36 = vadd.f32 0.001, %v450_v31  ;;  %v449_v37 = vand.u32 2147483647, %v1258_v33  ;;  %v154_v40 = vld [vmem:[#allocation7 + $0x10] sm:$0xff]  ;;  %v1267_v42 = vld [vmem:[#allocation2 + $0x68] sm:$0xff]  ;;  %962 = vlog2.f32 %v479_v30 }
  0x45   :  { %214 = vmatprep.subr.mxu0 %v89_v43  ;;  %883 = vmatpush3.msra.mxu1 %v156_v15  ;;  %v451_v41 = vand.u32 2147483647, %v1262_v35  ;;  %v138_v43 = vld [vmem:[#allocation5 + $0x190] sm:$0xff]  ;;  %v169_v44 = vld [vmem:[#allocation7 + $0x88] sm:$0xff]  ;;  %v1269_v46 = vld [vmem:[#allocation2 + $0x60] sm:$0xff] }
  0x46   :  { %215 = vmatpush1.msra.mxu0 %v88_v45  ;;  %884 = vmatprep.subr.mxu1 %v171_v24  ;;  %v481_v45 = vadd.f32 0.001, %v449_v37  ;;  %v153_v47 = vld [vmem:[#allocation7 + $0x8] sm:$0xff]  ;;  %964 = vlog2.f32 %v482_v36  ;;  %v454_v50 = vand.u32 2147483647, %v1267_v42  ;;  %v1272_v51 = vld [vmem:[#allocation2 + $0x78] sm:$0xff] }
  0x47   :  { %216 = vmatprep.subr.mxu0 %v151_v49  ;;  %885 = vmatpush3.msra.mxu1 %v155_v25  ;;  %v484_v49 = vadd.f32 0.001, %v452_v38  ;;  %v137_v52 = vld [vmem:[#allocation5 + $0x188] sm:$0xff]  ;;  %v152_v57 = vld [vmem:[#allocation7] sm:$0xff]  ;;  %v483_v58 = vadd.f32 0.001, %v451_v41 }
  0x48   :  { %217 = vmatpush2.msra.mxu0 %v150_v53  ;;  %886 = vmatprep.subr.mxu1 %v170_v28  ;;  %v168_v53 = vld [vmem:[#allocation7 + $0x80] sm:$0xff]  ;;  %v453_v59 = vand.u32 2147483647, %v1269_v46  ;;  %v135_v61 = vld [vmem:[#allocation5 + $0x178] sm:$0xff]  ;;  %966 = vlog2.f32 %v481_v45  ;;  %v456_v0 = vand.u32 2147483647, %v1272_v51 }
  0x49   :  { %218 = vmatprep.subr.mxu0 %v149_v56  ;;  %887 = vmatpush3.msra.mxu1 %v154_v40  ;;  %v949_v54 = vpop.eup %948  ;;  %v136_v56 = vld [vmem:[#allocation5 + $0x180] sm:$0xff]  ;;  %v1276_v1 = vld [vmem:[#allocation2 + $0x70] sm:$0xff]  ;;  %968 = vlog2.f32 %v484_v49  ;;  %v486_v6 = vadd.f32 0.001, %v454_v50  ;;  %v1278_v7 = vld [vmem:[#allocation2 + $0x88] sm:$0xff] }
  0x4a   :  { %219 = vmatpush2.msra.mxu0 %v148_v60  ;;  %888 = vmatprep.subr.mxu1 %v169_v44  ;;  %v951_v60 = vpop.eup %950  ;;  %v132_v12 = vld [vmem:[#allocation5 + $0x160] sm:$0xff]  ;;  %v131_v13 = vld [vmem:[#allocation5 + $0x158] sm:$0xff]  ;;  %970 = vlog2.f32 %v483_v58  ;;  %v485_v20 = vadd.f32 0.001, %v453_v59  ;;  %v458_v21 = vand.u32 2147483647, %v1278_v7 }
  0x4b   :  { %220 = vmatprep.subr.mxu0 %v147_v63  ;;  %889 = vmatpush3.msra.mxu1 %v153_v47  ;;  %v508_v63 = vmul.f32 0.6931472, %v949_v54  ;;  %v953_v2 = vpop.eup %952  ;;  %v506_v5 = vmul.f32 0.6931472, %v951_v60  ;;  %v1281_v15 = vld [vmem:[#allocation2 + $0x80] sm:$0xff]  ;;  %972 = vlog2.f32 %v486_v6  ;;  %v1284_v28 = vld [vmem:[#allocation2 + $0x98] sm:$0xff] }
  0x4c   :  { %221 = vmatpush2.msra.mxu0 %v146_v4  ;;  %v134_v4 = vld [vmem:[#allocation5 + $0x170] sm:$0xff]  ;;  %890 = vmatprep.subr.mxu1 %v168_v53  ;;  %v512_v10 = vmul.f32 0.6931472, %v953_v2  ;;  %v955_v11 = vpop.eup %954  ;;  %v488_v25 = vadd.f32 0.001, %v456_v0  ;;  %v128_v30 = vld [vmem:[#allocation5 + $0x140] sm:$0xff]  ;;  %974 = vlog2.f32 %v485_v20 }
  0x4d   :  { %222 = vmatprep.subr.mxu0 %v145_v9  ;;  %v133_v9 = vld [vmem:[#allocation5 + $0x168] sm:$0xff]  ;;  %891 = vmatpush3.msra.mxu1 %v152_v57  ;;  %v957_v16 = vpop.eup %956  ;;  %v127_v36 = vld [vmem:[#allocation5 + $0x138] sm:$0xff]  ;;  %v490_v38 = vadd.f32 0.001, %v458_v21  ;;  %v126_v41 = vld [vmem:[#allocation5 + $0x130] sm:$0xff] }
  0x4e   :  { %223 = vmatpush2.msra.mxu0 %v144_v14  ;;  %633 = vmatprep.mubr.f32.mxu1 %v508_v63  ;;  %v455_v14 = vand.u32 2147483647, %v1276_v1  ;;  %v959_v22 = vpop.eup %958  ;;  %v516_v24 = vmul.f32 0.6931472, %v957_v16  ;;  %976 = vlog2.f32 %v488_v25  ;;  %v460_v44 = vand.u32 2147483647, %v1284_v28 }
  0x4f   :  { %224 = vmatprep.subr.mxu0 %v143_v19  ;;  %634 = vmatmul.mubr.f32.vlgmr.msra.gmra.mxu1 %v506_v5  ;;  %v510_v19 = vmul.f32 0.6931472, %v955_v11  ;;  %v514_v37 = vmul.f32 0.6931472, %v959_v22  ;;  %v1290_v45 = vld [vmem:[#allocation2 + $0xa8] sm:$0xff]  ;;  %v124_v50 = vld [vmem:[#allocation5 + $0x120] sm:$0xff] }
  0x50   :  { %225 = vmatpush2.msra.mxu0 %v142_v23  ;;  %v130_v23 = vld [vmem:[#allocation5 + $0x150] sm:$0xff]  ;;  %638 = vmatprep.mubr.f32.mxu1 %v512_v10  ;;  %v961_v29 = vpop.eup %960  ;;  %v487_v31 = vadd.f32 0.001, %v455_v14  ;;  %v125_v49 = vld [vmem:[#allocation5 + $0x128] sm:$0xff]  ;;  %v123_v54 = vld [vmem:[#allocation5 + $0x118] sm:$0xff] }
  0x51   :  { %226 = vmatprep.subr.mxu0 %v141_v27  ;;  %v129_v27 = vld [vmem:[#allocation5 + $0x148] sm:$0xff]  ;;  %v963_v40 = vpop.eup %962  ;;  %v462_v57 = vand.u32 2147483647, %v1290_v45  ;;  %v1294_v58 = vld [vmem:[#allocation2 + $0xa0] sm:$0xff]  ;;  %v122_v60 = vld [vmem:[#allocation5 + $0x110] sm:$0xff] }
  0x52   :  { %227 = vmatpush2.msra.mxu0 %v140_v32  ;;  %v457_v32 = vand.u32 2147483647, %v1281_v15  ;;  %978 = vlog2.f32 %v487_v31  ;;  %v492_v63 = vadd.f32 0.001, %v460_v44  ;;  %v121_v2 = vld [vmem:[#allocation5 + $0x108] sm:$0xff]  ;;  %v120_v5 = vld [vmem:[#allocation5 + $0x100] sm:$0xff] }
  0x53   :  { %228 = vmatprep.subr.mxu0 %v139_v39  ;;  %639 = vmatmul.mubr.f32.gmra.mxu1 %v510_v19  ;;  %v1287_v39 = vld [vmem:[#allocation2 + $0x90] sm:$0xff]  ;;  %v965_v47 = vpop.eup %964  ;;  %980 = vlog2.f32 %v490_v38  ;;  %v494_v11 = vadd.f32 0.001, %v462_v57  ;;  %v1302_v19 = vld [vmem:[#allocation2 + $0xc8] sm:$0xff] }
  0x54   :  { %229 = vmatpush2.msra.mxu0 %v138_v43  ;;  %643 = vmatprep.mubr.f32.mxu1 %v516_v24  ;;  %v520_v43 = vmul.f32 0.6931472, %v961_v29  ;;  %v459_v53 = vand.u32 2147483647, %v1287_v39  ;;  %v466_v24 = vand.u32 2147483647, %v1302_v19 }
  0x55   :  { %230 = vmatprep.subr.mxu0 %v137_v52  ;;  %v489_v52 = vadd.f32 0.001, %v457_v32  ;;  %v967_v59 = vpop.eup %966  ;;  %v1310_v32 = vld [vmem:[#allocation2 + $0xd8] sm:$0xff] }
  0x56   :  { %231 = vmatpush2.msra.mxu0 %v136_v56  ;;  %v518_v56 = vmul.f32 0.6931472, %v963_v40  ;;  %v969_v0 = vpop.eup %968  ;;  %v491_v6 = vadd.f32 0.001, %v459_v53  ;;  %v522_v10 = vmul.f32 0.6931472, %v967_v59 }
  0x57   :  { %232 = vmatprep.subr.mxu0 %v135_v61  ;;  %644 = vmatmul.mubr.f32.gmra.mxu1 %v514_v37  ;;  %v524_v61 = vmul.f32 0.6931472, %v965_v47  ;;  %982 = vlog2.f32 %v489_v52  ;;  %v528_v14 = vmul.f32 0.6931472, %v969_v0  ;;  %v1318_v47 = vld [vmem:[#allocation2 + $0xe8] sm:$0xff]  ;;  %v1326_v59 = vld [vmem:[#allocation2 + $0xf8] sm:$0xff] }
  0x58   :  { %233 = vmatpush2.msra.mxu0 %v134_v4  ;;  %648 = vmatprep.mubr.f32.mxu1 %v520_v43  ;;  %v1296_v4 = vld [vmem:[#allocation2 + $0xb8] sm:$0xff]  ;;  %984 = vlog2.f32 %v492_v63  ;;  %v1316_v43 = vld [vmem:[#allocation2 + $0xd0] sm:$0xff] }
  0x59   :  { %234 = vmatprep.subr.mxu0 %v133_v9  ;;  %v461_v9 = vand.u32 2147483647, %v1294_v58  ;;  %v464_v16 = vand.u32 2147483647, %v1296_v4  ;;  %986 = vlog2.f32 %v491_v6 }
  0x5a   :  { %235 = vmatpush2.msra.mxu0 %v132_v12  ;;  %v1299_v12 = vld [vmem:[#allocation2 + $0xb0] sm:$0xff]  ;;  %988 = vlog2.f32 %v494_v11 }
  0x5b   :  { %236 = vmatprep.subr.mxu0 %v131_v13  ;;  %649 = vmatmul.mubr.f32.gmra.mxu1 %v518_v56  ;;  %v971_v13 = vpop.eup %970  ;;  %v463_v21 = vand.u32 2147483647, %v1299_v12  ;;  %v496_v29 = vadd.f32 0.001, %v464_v16  ;;  %v470_v56 = vand.u32 2147483647, %v1318_v47 }
  0x5c   :  { %237 = vmatpush2.msra.mxu0 %v130_v23  ;;  %653 = vmatprep.mubr.f32.mxu1 %v524_v61  ;;  %v973_v20 = vpop.eup %972  ;;  %v526_v22 = vmul.f32 0.6931472, %v971_v13  ;;  %v493_v23 = vadd.f32 0.001, %v461_v9  ;;  %v1331_v61 = vld [vmem:[#allocation2 + $0xf0] sm:$0xff] }
  0x5d   :  { %238 = vmatprep.subr.mxu0 %v129_v27  ;;  %v975_v25 = vpop.eup %974  ;;  %v532_v27 = vmul.f32 0.6931472, %v973_v20  ;;  %v471_v9 = vand.u32 2147483647, %v1331_v61 }
  0x5e   :  { %239 = vmatpush2.msra.mxu0 %v128_v30  ;;  %v1308_v30 = vld [vmem:[#allocation2 + $0xc0] sm:$0xff]  ;;  %v977_v31 = vpop.eup %976  ;;  %990 = vlog2.f32 %v493_v23 }
  0x5f   :  { %240 = vmatprep.subr.mxu0 %v127_v36  ;;  %654 = vmatmul.mubr.f32.gmra.mxu1 %v522_v10  ;;  %v498_v36 = vadd.f32 0.001, %v466_v24  ;;  %v465_v37 = vand.u32 2147483647, %v1308_v30  ;;  %v979_v38 = vpop.eup %978  ;;  %v536_v40 = vmul.f32 0.6931472, %v977_v31  ;;  %992 = vlog2.f32 %v496_v29 }
  0x60   :  { %241 = vmatpush2.msra.mxu0 %v126_v41  ;;  %658 = vmatprep.mubr.f32.mxu1 %v528_v14  ;;  %v468_v41 = vand.u32 2147483647, %v1310_v32  ;;  %v981_v44 = vpop.eup %980 }
  0x61   :  { %242 = vmatprep.subr.mxu0 %v125_v49  ;;  %v497_v49 = vadd.f32 0.001, %v465_v37  ;;  %v540_v53 = vmul.f32 0.6931472, %v981_v44 }
  0x62   :  { %243 = vmatpush2.msra.mxu0 %v124_v50  ;;  %v467_v50 = vand.u32 2147483647, %v1316_v43 }
  0x63   :  { %244 = vmatprep.subr.mxu0 %v123_v54  ;;  %659 = vmatmul.mubr.f32.gmra.mxu1 %v526_v22  ;;  %v500_v54 = vadd.f32 0.001, %v468_v41 }
  0x64   :  { %245 = vmatpush2.msra.mxu0 %v122_v60  ;;  %663 = vmatprep.mubr.f32.mxu1 %v532_v27  ;;  %v983_v52 = vpop.eup %982  ;;  %v499_v60 = vadd.f32 0.001, %v467_v50 }
  0x65   :  { %246 = vmatprep.subr.mxu0 %v121_v2  ;;  %v985_v57 = vpop.eup %984  ;;  %v502_v2 = vadd.f32 0.001, %v470_v56 }
  0x66   :  { %247 = vmatpush2.msra.mxu0 %v120_v5  ;;  %v987_v63 = vpop.eup %986  ;;  %v544_v0 = vmul.f32 0.6931472, %v985_v57  ;;  %v472_v5 = vand.u32 2147483647, %v1326_v59 }
  0x67   :  { %249 = vmatmul.mubr.f32.vlgmr.msra.gmra.mxu0 %v1234_v48  ;;  %v495_v48 = vadd.f32 0.001, %v463_v21  ;;  %v989_v6 = vpop.eup %988 }
  0x68   :  { %254 = vmatprep.mubr.f32.mxu0 %v1237_v55  ;;  %v530_v55 = vmul.f32 0.6931472, %v975_v25  ;;  %v548_v11 = vmul.f32 0.6931472, %v989_v6  ;;  %v504_v13 = vadd.f32 0.001, %v472_v5 }
  0x69   :  { %994 = vlog2.f32 %v495_v48 }
  0x6a   :  { %664 = vmatmul.mubr.f32.gmra.mxu1 %v530_v55  ;;  %996 = vlog2.f32 %v498_v36 }
  0x6b   :  { %255 = vmatmul.mubr.f32.gmra.mxu0 %v1240_v62  ;;  %v1321_v62 = vld [vmem:[#allocation2 + $0xe0] sm:$0xff]  ;;  %668 = vmatprep.mubr.f32.mxu1 %v536_v40  ;;  %998 = vlog2.f32 %v497_v49  ;;  %v991_v10 = vpop.eup %990 }
  0x6c   :  { %260 = vmatprep.mubr.f32.mxu0 %v1243_v3  ;;  %v534_v3 = vmul.f32 0.6931472, %v979_v38  ;;  %1000 = vlog2.f32 %v500_v54  ;;  %v993_v14 = vpop.eup %992 }
  0x6d   :  { %1002 = vlog2.f32 %v499_v60  ;;  %v552_v20 = vmul.f32 0.6931472, %v993_v14 }
  0x6e   :  { %669 = vmatmul.mubr.f32.gmra.mxu1 %v534_v3  ;;  %1004 = vlog2.f32 %v502_v2 }
  0x6f   :  { %261 = vmatmul.mubr.f32.gmra.mxu0 %v1246_v8  ;;  %v469_v8 = vand.u32 2147483647, %v1321_v62  ;;  %673 = vmatprep.mubr.f32.mxu1 %v540_v53 }
  0x70   :  { %266 = vmatprep.mubr.f32.mxu0 %v1249_v17  ;;  %v538_v17 = vmul.f32 0.6931472, %v983_v52 }
  0x72   :  { %674 = vmatmul.mubr.f32.gmra.mxu1 %v538_v17 }
  0x73   :  { %267 = vmatmul.mubr.f32.gmra.mxu0 %v1251_v18  ;;  %v542_v18 = vmul.f32 0.6931472, %v987_v63  ;;  %678 = vmatprep.mubr.f32.mxu1 %v544_v0 }
  0x74   :  { %272 = vmatprep.mubr.f32.mxu0 %v1255_v26  ;;  %v501_v26 = vadd.f32 0.001, %v469_v8 }
  0x76   :  { %679 = vmatmul.mubr.f32.gmra.mxu1 %v542_v18  ;;  %1006 = vlog2.f32 %v501_v26  ;;  %v995_v16 = vpop.eup %994 }
  0x77   :  { %273 = vmatmul.mubr.f32.gmra.mxu0 %v1258_v33  ;;  %v546_v33 = vmul.f32 0.6931472, %v991_v10  ;;  %683 = vmatprep.mubr.f32.mxu1 %v548_v11  ;;  %1008 = vlog2.f32 %v504_v13  ;;  %v997_v21 = vpop.eup %996  ;;  %v550_v22 = vmul.f32 0.6931472, %v995_v16 }
  0x78   :  { %278 = vmatprep.mubr.f32.mxu0 %v1260_v34  ;;  %v503_v34 = vadd.f32 0.001, %v471_v9  ;;  %v999_v23 = vpop.eup %998 }
  0x79   :  { %v554_v24 = vmul.f32 0.6931472, %v999_v23 }
  0x7a   :  { %684 = vmatmul.mubr.f32.gmra.mxu1 %v546_v33  ;;  %1010 = vlog2.f32 %v503_v34 }
  0x7b   :  { %279 = vmatmul.mubr.f32.gmra.mxu0 %v1262_v35  ;;  %688 = vmatprep.mubr.f32.mxu1 %v552_v20  ;;  %v556_v35 = vmul.f32 0.6931472, %v997_v21 }
  0x7c   :  { %284 = vmatprep.mubr.f32.mxu0 %v1267_v42  ;;  %v1001_v42 = vpop.eup %1000 }
  0x7d   :  { %v1003_v25 = vpop.eup %1002  ;;  %v560_v27 = vmul.f32 0.6931472, %v1001_v42 }
  0x7e   :  { %689 = vmatmul.mubr.f32.gmra.mxu1 %v550_v22  ;;  %v1005_v29 = vpop.eup %1004 }
  0x7f   :  { %285 = vmatmul.mubr.f32.gmra.mxu0 %v1269_v46  ;;  %693 = vmatprep.mubr.f32.mxu1 %v556_v35  ;;  %v558_v46 = vmul.f32 0.6931472, %v1003_v25  ;;  %v564_v31 = vmul.f32 0.6931472, %v1005_v29 }
  0x80   :  { %290 = vmatprep.mubr.f32.mxu0 %v1272_v51 }
  0x82   :  { %694 = vmatmul.mubr.f32.gmra.mxu1 %v554_v24 }
  0x83   :  { %291 = vmatmul.mubr.f32.gmra.mxu0 %v1276_v1  ;;  %v1007_v51 = vpop.eup %1006  ;;  %698 = vmatprep.mubr.f32.mxu1 %v560_v27 }
  0x84   :  { %296 = vmatprep.mubr.f32.mxu0 %v1278_v7  ;;  %v1009_v48 = vpop.eup %1008  ;;  %v562_v1 = vmul.f32 0.6931472, %v1007_v51 }
  0x85   :  { %v568_v55 = vmul.f32 0.6931472, %v1009_v48 }
  0x86   :  { %699 = vmatmul.mubr.f32.gmra.mxu1 %v558_v46 }
  0x87   :  { %297 = vmatmul.mubr.f32.gmra.mxu0 %v1281_v15  ;;  %v1011_v7 = vpop.eup %1010  ;;  %703 = vmatprep.mubr.f32.mxu1 %v564_v31 }
  0x88   :  { %302 = vmatprep.mubr.f32.mxu0 %v1284_v28  ;;  %v566_v15 = vmul.f32 0.6931472, %v1011_v7 }
  0x8a   :  { %704 = vmatmul.mubr.f32.gmra.mxu1 %v562_v1 }
  0x8b   :  { %303 = vmatmul.mubr.f32.gmra.mxu0 %v1287_v39  ;;  %708 = vmatprep.mubr.f32.mxu1 %v568_v55 }
  0x8c   :  { %308 = vmatprep.mubr.f32.mxu0 %v1290_v45 }
  0x8e   :  { %709 = vmatmul.mubr.f32.gmra.mxu1 %v566_v15 }
  0x8f   :  { %309 = vmatmul.mubr.f32.gmra.mxu0 %v1294_v58 }
  0x90   :  { %314 = vmatprep.mubr.f32.mxu0 %v1296_v4 }
  0x93   :  { %315 = vmatmul.mubr.f32.gmra.mxu0 %v1299_v12 }
  0x94   :  { %320 = vmatprep.mubr.f32.mxu0 %v1302_v19 }
  0x97   :  { %321 = vmatmul.mubr.f32.gmra.mxu0 %v1308_v30 }
  0x98   :  { %326 = vmatprep.mubr.f32.mxu0 %v1310_v32 }
  0x9b   :  { %327 = vmatmul.mubr.f32.gmra.mxu0 %v1316_v43 }
  0x9c   :  { %332 = vmatprep.mubr.f32.mxu0 %v1318_v47 }
  0x9f   :  { %333 = vmatmul.mubr.f32.gmra.mxu0 %v1321_v62 }
  0xa0   :  { %338 = vmatprep.mubr.f32.mxu0 %v1326_v59 }
  0xa3   :  { %339 = vmatmul.mubr.f32.gmra.mxu0 %v1331_v61 }
 0x10f   :  { %v892_v28 = vpop.f32.mrf.mxu1 }
 0x111   :  { %v893_v39 = vpop.f32.mrf.mxu1 }
 0x112   :  { %v894_v8 = vadd.f32 %v893_v39, %v892_v28 }
 0x113   :  { %v895_v45 = vpop.f32.mrf.mxu1 }
 0x114   :  { %v714_v6 = vmul.f32 1.442695, %v894_v8 }
 0x115   :  { %v896_v58 = vpop.f32.mrf.mxu1 }
 0x116   :  { %v897_v61 = vadd.f32 %v896_v58, %v895_v45 }
 0x117   :  { %v898_v4 = vpop.f32.mrf.mxu1 }
 0x118   :  { %v716_v10 = vmul.f32 1.442695, %v897_v61 }
 0x119   :  { %v899_v12 = vpop.f32.mrf.mxu1 }
 0x11a   :  { %v900_v16 = vadd.f32 %v899_v12, %v898_v4 }
 0x11b   :  { %v901_v19 = vpop.f32.mrf.mxu1 }
 0x11c   :  { %v718_v42 = vmul.f32 1.442695, %v900_v16 }
 0x11d   :  { %v902_v30 = vpop.f32.mrf.mxu1 }
 0x11e   :  { %v903_v25 = vadd.f32 %v902_v30, %v901_v19 }
 0x11f   :  { %v1360_v32 = vpop.f32.mrf.mxu1 }
 0x120   :  { %v720_v48 = vmul.f32 1.442695, %v903_v25 }
 0x121   :  { %v1362_v40 = vpop.f32.mrf.mxu1 }
 0x122   :  { %v906_v55 = vadd.f32 %v1362_v40, %v1360_v32 }
 0x123   :  { %v1366_v43 = vpop.f32.mrf.mxu1 }
 0x124   :  { %v722_v30 = vmul.f32 1.442695, %v906_v55 }
 0x125   :  { %v1368_v62 = vpop.f32.mrf.mxu1 }
 0x127   :  { %v1358_v36 = vpop.f32.mrf.mxu0 }
 0x129   :  { %v252_v37 = vpop.f32.mrf.mxu0 }
 0x12a   :  { %v844_v38 = vmul.f32 -1.442695, %v252_v37  ;;  %v1372_v49 = vpop.f32.mrf.mxu1 }
 0x12b   :  { %v1364_v41 = vpop.f32.mrf.mxu0 }
 0x12c   :  { %1012 = vpow2.f32 %v844_v38  ;;  %v1374_v53 = vpop.f32.mrf.mxu1  ;;  %v909_v38 = vadd.f32 %v1368_v62, %v1366_v43 }
 0x12d   :  { %v258_v44 = vpop.f32.mrf.mxu0  ;;  %v912_v43 = vadd.f32 %v1374_v53, %v1372_v49 }
 0x12e   :  { %v845_v47 = vmul.f32 -1.442695, %v258_v44  ;;  %v1378_v56 = vpop.f32.mrf.mxu1 }
 0x12f   :  { %v1370_v3 = vpop.f32.mrf.mxu0 }
 0x130   :  { %1014 = vpow2.f32 %v845_v47  ;;  %v1380_v17 = vpop.f32.mrf.mxu1 }
 0x131   :  { %v264_v50 = vpop.f32.mrf.mxu0 }
 0x132   :  { %v846_v52 = vmul.f32 -1.442695, %v264_v50  ;;  %v1384_v63 = vpop.f32.mrf.mxu1 }
 0x133   :  { %v1376_v54 = vpop.f32.mrf.mxu0 }
 0x134   :  { %1016 = vpow2.f32 %v846_v52  ;;  %v1386_v26 = vpop.f32.mrf.mxu1 }
 0x135   :  { %v270_v57 = vpop.f32.mrf.mxu0 }
 0x136   :  { %v847_v59 = vmul.f32 -1.442695, %v270_v57  ;;  %v1390_v11 = vpop.f32.mrf.mxu1 }
 0x137   :  { %v1382_v60 = vpop.f32.mrf.mxu0 }
 0x138   :  { %1018 = vpow2.f32 %v847_v59  ;;  %v1394_v21 = vpop.f32.mrf.mxu1 }
 0x139   :  { %v1013_v0 = vpop.eup %1012  ;;  %v276_v2 = vpop.f32.mrf.mxu0 }
 0x13a   :  { %v393_v5 = vadd.f32 1.0, %v1013_v0  ;;  %v848_v18 = vmul.f32 -1.442695, %v276_v2  ;;  %v1398_v29 = vpop.f32.mrf.mxu1  ;;  %v724_v2 = vmul.f32 1.442695, %v909_v38 }
 0x13b   :  { %v1388_v9 = vpop.f32.mrf.mxu0 }
 0x13c   :  { %1020 = vrcp.f32 %v393_v5  ;;  %v1404_v15 = vpop.f32.mrf.mxu1 }
 0x13d   :  { %v1015_v13 = vpop.eup %1014  ;;  %1022 = vpow2.f32 %v848_v18  ;;  %v282_v14 = vpop.f32.mrf.mxu0 }
 0x13e   :  { %v394_v33 = vadd.f32 1.0, %v1015_v13  ;;  %1024 = vpow2.f32 %v714_v6  ;;  %v849_v34 = vmul.f32 -1.442695, %v282_v14  ;;  %v1411_v47 = vpop.f32.mrf.mxu1 }
 0x13f   :  { %1026 = vpow2.f32 %v716_v10  ;;  %v1392_v20 = vpop.f32.mrf.mxu0 }
 0x140   :  { %1028 = vrcp.f32 %v394_v33  ;;  %v1418_v6 = vpop.f32.mrf.mxu1 }
 0x141   :  { %v1017_v22 = vpop.eup %1016  ;;  %1030 = vpow2.f32 %v849_v34  ;;  %v288_v23 = vpop.f32.mrf.mxu0 }
 0x142   :  { %v395_v35 = vadd.f32 1.0, %v1017_v22  ;;  %v850_v24 = vmul.f32 -1.442695, %v288_v23  ;;  %v726_v23 = vmul.f32 1.442695, %v912_v43 }
 0x143   :  { %v1396_v27 = vpop.f32.mrf.mxu0 }
 0x144   :  { %1032 = vrcp.f32 %v395_v35 }
 0x145   :  { %v1019_v46 = vpop.eup %1018  ;;  %1034 = vpow2.f32 %v850_v24  ;;  %v294_v51 = vpop.f32.mrf.mxu0 }
 0x146   :  { %v396_v31 = vadd.f32 1.0, %v1019_v46  ;;  %1036 = vpow2.f32 %v718_v42  ;;  %v851_v1 = vmul.f32 -1.442695, %v294_v51  ;;  %v1425_v42 = vpop.f32.mrf.mxu1 }
 0x147   :  { %v1400_v7 = vpop.f32.mrf.mxu0 }
 0x148   :  { %1038 = vrcp.f32 %v396_v31 }
 0x149   :  { %v1021_v28 = vpop.eup %1020  ;;  %1040 = vpow2.f32 %v851_v1  ;;  %v300_v39 = vpop.f32.mrf.mxu0  ;;  %v918_v1 = vadd.f32 %v1386_v26, %v1384_v63 }
 0x14a   :  { %v1023_v45 = vpop.eup %1022  ;;  %v762_v58 = vsub.f32 1.0, %v1021_v28  ;;  %1042 = vpow2.f32 %v720_v48  ;;  %v852_v4 = vmul.f32 -1.442695, %v300_v39  ;;  %v746_v32 = vmul.f32 %v1021_v28, %v1358_v36 }
 0x14b   :  { %v1025_v12 = vpop.eup %1024  ;;  %v397_v19 = vadd.f32 1.0, %v1023_v45  ;;  %v1406_v37 = vpop.f32.mrf.mxu0 }
 0x14c   :  { %v1027_v44 = vpop.eup %1026  ;;  %v778_v40 = vmul.f32 %v1025_v12, %v762_v58  ;;  %1044 = vpow2.f32 %v852_v4  ;;  %v1434_v58 = vpop.f32.mrf.mxu1 }
 0x14d   :  { %v1029_v50 = vpop.eup %1028  ;;  %1046 = vrcp.f32 %v397_v19  ;;  %v306_v52 = vpop.f32.mrf.mxu0 }
 0x14e   :  { %v1031_v57 = vpop.eup %1030  ;;  %v794_v59 = vadd.f32 %v778_v40, %v746_v32  ;;  %v763_v8 = vsub.f32 1.0, %v1029_v50  ;;  %v853_v61 = vmul.f32 -1.442695, %v306_v52  ;;  %1048 = vpow2.f32 %v722_v30 }
 0x14f   :  { %v398_v0 = vadd.f32 1.0, %v1031_v57  ;;  %v1413_v5 = vpop.f32.mrf.mxu0  ;;  %v747_v36 = vmul.f32 %v1029_v50, %v1364_v41  ;;  %v915_v41 = vadd.f32 %v1380_v17, %v1378_v56  ;;  %v921_v17 = vadd.f32 %v1394_v21, %v1390_v11 }
 0x150   :  { %810 = vst [vmem:[#allocation8] sm:$0xff] %v794_v59  ;;  %v779_v62 = vmul.f32 %v1027_v44, %v763_v8  ;;  %1050 = vpow2.f32 %v853_v61  ;;  %v730_v30 = vmul.f32 1.442695, %v918_v1 }
 0x151   :  { %v1033_v18 = vpop.eup %1032  ;;  %1052 = vrcp.f32 %v398_v0  ;;  %v312_v10 = vpop.f32.mrf.mxu0  ;;  %v728_v56 = vmul.f32 1.442695, %v915_v41  ;;  %v732_v11 = vmul.f32 1.442695, %v921_v17  ;;  %v924_v0 = vadd.f32 %v1404_v15, %v1398_v29 }
 0x152   :  { %v1035_v13 = vpop.eup %1034  ;;  %v795_v14 = vadd.f32 %v779_v62, %v747_v36  ;;  %v764_v33 = vsub.f32 1.0, %v1033_v18  ;;  %v854_v34 = vmul.f32 -1.442695, %v312_v10  ;;  %1054 = vpow2.f32 %v724_v2 }
 0x153   :  { %v1037_v16 = vpop.eup %1036  ;;  %v399_v22 = vadd.f32 1.0, %v1035_v13  ;;  %v1420_v35 = vpop.f32.mrf.mxu0  ;;  %v748_v49 = vmul.f32 %v1033_v18, %v1370_v3  ;;  %v927_v29 = vadd.f32 %v1418_v6, %v1411_v47 }
 0x154   :  { %811 = vst [vmem:[#allocation8 + $0x8] sm:$0xff] %v795_v14  ;;  %v780_v53 = vmul.f32 %v1037_v16, %v764_v33  ;;  %1056 = vpow2.f32 %v854_v34  ;;  %v734_v16 = vmul.f32 1.442695, %v924_v0 }
 0x155   :  { %v1039_v24 = vpop.eup %1038  ;;  %1058 = vrcp.f32 %v399_v22  ;;  %v318_v25 = vpop.f32.mrf.mxu0 }
 0x156   :  { %v1041_v46 = vpop.eup %1040  ;;  %v796_v51 = vadd.f32 %v780_v53, %v748_v49  ;;  %v765_v31 = vsub.f32 1.0, %v1039_v24  ;;  %v855_v48 = vmul.f32 -1.442695, %v318_v25  ;;  %1060 = vpow2.f32 %v726_v23 }
 0x157   :  { %v1043_v55 = vpop.eup %1042  ;;  %v400_v28 = vadd.f32 1.0, %v1041_v46  ;;  %v1429_v3 = vpop.f32.mrf.mxu0  ;;  %v749_v39 = vmul.f32 %v1039_v24, %v1376_v54 }
 0x158   :  { %812 = vst [vmem:[#allocation8 + $0x10] sm:$0xff] %v796_v51  ;;  %v781_v45 = vmul.f32 %v1043_v55, %v765_v31  ;;  %1062 = vpow2.f32 %v855_v48  ;;  %v1438_v54 = vpop.f32.mrf.mxu1  ;;  %v736_v48 = vmul.f32 1.442695, %v927_v29  ;;  %v930_v55 = vadd.f32 %v1434_v58, %v1425_v42 }
 0x159   :  { %v1045_v4 = vpop.eup %1044  ;;  %1064 = vrcp.f32 %v400_v28  ;;  %v324_v12 = vpop.f32.mrf.mxu0 }
 0x15a   :  { %v1047_v63 = vpop.eup %1046  ;;  %v797_v26 = vadd.f32 %v781_v45, %v749_v39  ;;  %v401_v19 = vadd.f32 1.0, %v1045_v4  ;;  %v856_v38 = vmul.f32 -1.442695, %v324_v12  ;;  %1066 = vpow2.f32 %v728_v56  ;;  %v932_v18 = vpop.f32.mrf.mxu1 }
 0x15b   :  { %v766_v44 = vsub.f32 1.0, %v1047_v63  ;;  %v1436_v32 = vpop.f32.mrf.mxu0  ;;  %v1049_v21 = vpop.eup %1048  ;;  %v750_v50 = vmul.f32 %v1047_v63, %v1382_v60 }
 0x15c   :  { %813 = vst [vmem:[#allocation8 + $0x18] sm:$0xff] %v797_v26  ;;  %1068 = vrcp.f32 %v401_v19  ;;  %v934_v53 = vpop.f32.mrf.mxu1  ;;  %v738_v19 = vmul.f32 1.442695, %v930_v55 }
 0x15d   :  { %v1051_v40 = vpop.eup %1050  ;;  %v782_v52 = vmul.f32 %v1049_v21, %v766_v44  ;;  %1070 = vpow2.f32 %v856_v38  ;;  %v330_v57 = vpop.f32.mrf.mxu0 }
 0x15e   :  { %v1053_v59 = vpop.eup %1052  ;;  %v402_v8 = vadd.f32 1.0, %v1051_v40  ;;  %1072 = vpow2.f32 %v730_v30  ;;  %v857_v61 = vmul.f32 -1.442695, %v330_v57  ;;  %v935_v56 = vpop.f32.mrf.mxu1  ;;  %v933_v30 = vadd.f32 %v932_v18, %v1438_v54 }
 0x15f   :  { %v798_v2 = vadd.f32 %v782_v52, %v750_v50  ;;  %v767_v43 = vsub.f32 1.0, %v1053_v59  ;;  %1074 = vpow2.f32 %v732_v11  ;;  %v1443_v36 = vpop.f32.mrf.mxu0  ;;  %v1055_v62 = vpop.eup %1054  ;;  %v751_v60 = vmul.f32 %v1053_v59, %v1388_v9 }
 0x160   :  { %1076 = vrcp.f32 %v402_v8  ;;  %v937_v44 = vpop.f32.mrf.mxu1  ;;  %v740_v52 = vmul.f32 1.442695, %v933_v30  ;;  %v936_v57 = vadd.f32 %v935_v56, %v934_v53 }
 0x161   :  { %v1057_v10 = vpop.eup %1056  ;;  %814 = vst [vmem:[#allocation8 + $0x20] sm:$0xff] %v798_v2  ;;  %v783_v13 = vmul.f32 %v1055_v62, %v767_v43  ;;  %1078 = vpow2.f32 %v857_v61  ;;  %v336_v14 = vpop.f32.mrf.mxu0 }
 0x162   :  { %v1059_v33 = vpop.eup %1058  ;;  %v403_v34 = vadd.f32 1.0, %v1057_v10  ;;  %v858_v22 = vmul.f32 -1.442695, %v336_v14  ;;  %v938_v54 = vpop.f32.mrf.mxu1  ;;  %v742_v18 = vmul.f32 1.442695, %v936_v57 }
 0x163   :  { %v799_v15 = vadd.f32 %v783_v13, %v751_v60  ;;  %v768_v23 = vsub.f32 1.0, %v1059_v33  ;;  %v1448_v41 = vpop.f32.mrf.mxu0  ;;  %v1061_v49 = vpop.eup %1060  ;;  %v752_v9 = vmul.f32 %v1059_v33, %v1392_v20  ;;  %v939_v10 = vadd.f32 %v938_v54, %v937_v44 }
 0x164   :  { %1080 = vrcp.f32 %v403_v34 }
 0x165   :  { %v1063_v24 = vpop.eup %1062  ;;  %815 = vst [vmem:[#allocation8 + $0x28] sm:$0xff] %v799_v15  ;;  %v784_v25 = vmul.f32 %v1061_v49, %v768_v23  ;;  %1082 = vpow2.f32 %v858_v22  ;;  %v342_v46 = vpop.f32.mrf.mxu0  ;;  %v744_v29 = vmul.f32 1.442695, %v939_v10 }
 0x166   :  { %v1065_v51 = vpop.eup %1064  ;;  %v404_v31 = vadd.f32 1.0, %v1063_v24  ;;  %1084 = vpow2.f32 %v734_v16  ;;  %v859_v1 = vmul.f32 -1.442695, %v342_v46 }
 0x167   :  { %v800_v47 = vadd.f32 %v784_v25, %v752_v9  ;;  %v769_v6 = vsub.f32 1.0, %v1065_v51  ;;  %v1067_v28 = vpop.eup %1066  ;;  %v753_v20 = vmul.f32 %v1065_v51, %v1396_v27 }
 0x168   :  { %1086 = vrcp.f32 %v404_v31 }
 0x169   :  { %v1069_v17 = vpop.eup %1068  ;;  %816 = vst [vmem:[#allocation8 + $0x30] sm:$0xff] %v800_v47  ;;  %v785_v39 = vmul.f32 %v1067_v28, %v769_v6  ;;  %1088 = vpow2.f32 %v859_v1 }
 0x16a   :  { %v1071_v45 = vpop.eup %1070  ;;  %v770_v4 = vsub.f32 1.0, %v1069_v17  ;;  %1090 = vpow2.f32 %v736_v48  ;;  %v754_v42 = vmul.f32 %v1069_v17, %v1400_v7 }
 0x16b   :  { %v1073_v12 = vpop.eup %1072  ;;  %v801_v63 = vadd.f32 %v785_v39, %v753_v20  ;;  %v405_v26 = vadd.f32 1.0, %v1071_v45 }
 0x16c   :  { %v1075_v38 = vpop.eup %1074  ;;  %v786_v58 = vmul.f32 %v1073_v12, %v770_v4 }
 0x16d   :  { %v1077_v11 = vpop.eup %1076  ;;  %817 = vst [vmem:[#allocation8 + $0x38] sm:$0xff] %v801_v63  ;;  %1092 = vrcp.f32 %v405_v26 }
 0x16e   :  { %v1079_v27 = vpop.eup %1078  ;;  %v802_v21 = vadd.f32 %v786_v58, %v754_v42  ;;  %v771_v40 = vsub.f32 1.0, %v1077_v11  ;;  %1094 = vpow2.f32 %v738_v19  ;;  %v755_v59 = vmul.f32 %v1077_v11, %v1406_v37 }
 0x16f   :  { %v406_v50 = vadd.f32 1.0, %v1079_v27 }
 0x170   :  { %818 = vst [vmem:[#allocation8 + $0x40] sm:$0xff] %v802_v21  ;;  %v787_v8 = vmul.f32 %v1075_v38, %v771_v40 }
 0x171   :  { %v1081_v61 = vpop.eup %1080  ;;  %1096 = vrcp.f32 %v406_v50 }
 0x172   :  { %v1083_v7 = vpop.eup %1082  ;;  %v803_v0 = vadd.f32 %v787_v8, %v755_v59  ;;  %v772_v2 = vsub.f32 1.0, %v1081_v61  ;;  %1098 = vpow2.f32 %v740_v52  ;;  %v756_v60 = vmul.f32 %v1081_v61, %v1413_v5 }
 0x173   :  { %v1085_v43 = vpop.eup %1084  ;;  %v407_v62 = vadd.f32 1.0, %v1083_v7 }
 0x174   :  { %819 = vst [vmem:[#allocation8 + $0x48] sm:$0xff] %v803_v0  ;;  %v788_v13 = vmul.f32 %v1085_v43, %v772_v2 }
 0x175   :  { %v1087_v14 = vpop.eup %1086  ;;  %1100 = vrcp.f32 %v407_v62 }
 0x176   :  { %v1089_v37 = vpop.eup %1088  ;;  %v804_v33 = vadd.f32 %v788_v13, %v756_v60  ;;  %v773_v34 = vsub.f32 1.0, %v1087_v14  ;;  %1102 = vpow2.f32 %v742_v18  ;;  %v757_v15 = vmul.f32 %v1087_v14, %v1420_v35 }
 0x177   :  { %v1091_v16 = vpop.eup %1090  ;;  %v408_v22 = vadd.f32 1.0, %v1089_v37 }
 0x178   :  { %820 = vst [vmem:[#allocation8 + $0x50] sm:$0xff] %v804_v33  ;;  %v789_v23 = vmul.f32 %v1091_v16, %v773_v34 }
 0x179   :  { %1104 = vrcp.f32 %v408_v22 }
 0x17a   :  { %v1093_v49 = vpop.eup %1092  ;;  %v805_v53 = vadd.f32 %v789_v23, %v757_v15  ;;  %1106 = vpow2.f32 %v744_v29 }
 0x17b   :  { %v774_v24 = vsub.f32 1.0, %v1093_v49  ;;  %v1095_v5 = vpop.eup %1094  ;;  %v758_v9 = vmul.f32 %v1093_v49, %v1429_v3 }
 0x17c   :  { %821 = vst [vmem:[#allocation8 + $0x58] sm:$0xff] %v805_v53 }
 0x17d   :  { %v790_v25 = vmul.f32 %v1095_v5, %v774_v24 }
 0x17e   :  { %v1097_v46 = vpop.eup %1096 }
 0x17f   :  { %v806_v51 = vadd.f32 %v790_v25, %v758_v9  ;;  %v775_v31 = vsub.f32 1.0, %v1097_v46  ;;  %v1099_v48 = vpop.eup %1098  ;;  %v759_v1 = vmul.f32 %v1097_v46, %v1436_v32 }
 0x181   :  { %822 = vst [vmem:[#allocation8 + $0x60] sm:$0xff] %v806_v51  ;;  %v791_v35 = vmul.f32 %v1099_v48, %v775_v31 }
 0x182   :  { %v1101_v47 = vpop.eup %1100 }
 0x183   :  { %v807_v6 = vadd.f32 %v791_v35, %v759_v1  ;;  %v776_v55 = vsub.f32 1.0, %v1101_v47  ;;  %v1103_v28 = vpop.eup %1102  ;;  %v760_v56 = vmul.f32 %v1101_v47, %v1443_v36 }
 0x185   :  { %823 = vst [vmem:[#allocation8 + $0x68] sm:$0xff] %v807_v6  ;;  %v792_v17 = vmul.f32 %v1103_v28, %v776_v55 }
 0x186   :  { %v1105_v20 = vpop.eup %1104 }
 0x187   :  { %v808_v39 = vadd.f32 %v792_v17, %v760_v56  ;;  %v777_v3 = vsub.f32 1.0, %v1105_v20  ;;  %v1107_v45 = vpop.eup %1106  ;;  %v761_v4 = vmul.f32 %v1105_v20, %v1448_v41 }
 0x189   :  { %824 = vst [vmem:[#allocation8 + $0x70] sm:$0xff] %v808_v39  ;;  %v793_v32 = vmul.f32 %v1107_v45, %v777_v3 }
 0x18b   :  { %v809_v12 = vadd.f32 %v793_v32, %v761_v4 }
 0x18d   :  { %825 = vst [vmem:[#allocation8 + $0x78] sm:$0xff] %v809_v12 }
 0x18e   :  { %1179 = shalt.err (!%p1176_p5)
}
 0x18f   :  { %837 = dma.vmem_to_hbm [thread:$0]  %s832_s2, 2048, %s1472_s3, [#allocation4], %s1199_s1, %s1199_s1, %s1200_s27  }
 0x190   :  { %1192 = dma.done.wait [#allocation4], 2048  }
 0x191   :  { %1193 = vsyncadd [#allocation4], 4294965248 }
 0x192   :  { %841 = vsyncpa [#allocation3], 1 }
 0x193   :  { %842 = vsyncpa [#allocation6], 1 }
 0x194   :  { %843 = vsyncpa [#allocation4], 1 }

</bundles_post_ra>
